<compile_context>
chip_gen: v6e
topology: v6e:2x2x1
jax: 0.10.0
libtpu: 0.0.40
codegen_flags: <defaults>
</compile_context>

<pallas_src>
import jax
import jax.numpy as jnp
from jax.experimental import pallas as pl
from jax.experimental.pallas import tpu as pltpu


def _log_sigmoid(x):
    # Numerically stable log(sigmoid(x)) = min(x, 0) - log(1 + exp(-|x|)).
    # (log1p would be marginally more accurate near 0, but the difference is
    # below f32 resolution at loss scale; plain log is kept for a guaranteed
    # clean Mosaic lowering.)
    return jnp.minimum(x, 0.0) - jnp.log(1.0 + jnp.exp(-jnp.abs(x)))


def _make_kernel(batch_size, tile_b):
    """Kernel closure over the static true batch size and batch-tile size."""

    def kernel(inp_ref, out_ref, noise_ref, loss_ref):
        inp = inp_ref[...].astype(jnp.float32)        # (tb, D)
        out = out_ref[...].astype(jnp.float32)        # (tb, D)
        noise = noise_ref[...].astype(jnp.float32)    # (tb, N, D)

        # Positive term: log sigmoid(out . inp), per batch row.
        out_dot = jnp.sum(inp * out, axis=-1, keepdims=True)            # (tb, 1)
        pos = _log_sigmoid(out_dot)                                     # (tb, 1)

        # Negative term: sum_n log sigmoid(-(noise_n . inp)), per batch row.
        # Negate the small (tb, N) dot result, not the (tb, N, D) tensor.
        noise_dot = jnp.sum(noise * inp[:, None, :], axis=-1)           # (tb, N)
        neg = jnp.sum(_log_sigmoid(-noise_dot), axis=-1, keepdims=True)  # (tb, 1)

        per_row = pos + neg                                             # (tb, 1)

        # Mask padded batch rows so they contribute exactly 0 to the tile sum
        # (otherwise each pad row would add -(N+1)*log(2)).
        row = (pl.program_id(0) * tile_b
               + jax.lax.broadcasted_iota(jnp.int32, (tile_b, 1), 0))
        per_row = jnp.where(row < batch_size, per_row, 0.0)

        tile_sum = jnp.sum(per_row, keepdims=True)                      # (1, 1)
        loss_ref[...] = jnp.broadcast_to(tile_sum.reshape(1, 1, 1),
                                         loss_ref.shape)

    return kernel


def _round_up(x, m):
    return ((x + m - 1) // m) * m


def _vmem_capacity_bytes():
    try:
        return int(pltpu.get_tpu_info().vmem_capacity_bytes)
    except Exception:
        return 64 * 1024 * 1024  # conservative fallback: v7x per-TC VMEM


def _pick_tile_b(B, N, D, itemsize, vmem_cap):
    """Largest batch tile (multiple of the sublane quantum) whose input tiles
    fit a per-buffer VMEM budget, with >= 2 grid steps whenever B allows."""
    sub = max(8, 32 // itemsize)          # sublane quantum: 8 f32 / 16 bf16
    d_pad = _round_up(D, 128)             # lane padding of each block
    n_pad = _round_up(N, sub)             # sublane padding of the (N, D) slab
    # True VMEM bytes per batch row across the three input tiles (incl. tiling
    # padding of the (tb, N, D) noise block and the two (tb, D) blocks).
    bytes_per_row = (n_pad * d_pad + 2 * d_pad) * itemsize
    # One buffer-set budget; with double-buffering total input VMEM ~ cap/4.
    budget = vmem_cap // 8
    tb = max(sub, budget // max(1, bytes_per_row))
    b_ceil = _round_up(B, sub)
    if b_ceil > sub:
        # At least 2 grid steps: keeps both v7x TensorCores busy and lets the
        # pipeline overlap DMA with compute; negligible cost on v5e/v6e.
        tb = min(tb, _round_up(-(-b_ceil // 2), sub))
    tb = min(tb, b_ceil)
    return max(sub, (tb // sub) * sub)


def negative_sampling_loss(inp_vectors, out_vectors, noise_vectors, *,
                           downcast_to_bf16=False):
    """Pallas TPU implementation of NegativeSamplingLoss.forward. Returns scalar f32."""
    B, D = inp_vectors.shape
    _, N, _ = noise_vectors.shape

    if downcast_to_bf16:
        # Halves HBM read traffic on this bandwidth-bound kernel; the kernel
        # still accumulates in f32 (required on v5e: no bf16 VPU/EUP).
        inp_vectors = inp_vectors.astype(jnp.bfloat16)
        out_vectors = out_vectors.astype(jnp.bfloat16)
        noise_vectors = noise_vectors.astype(jnp.bfloat16)

    itemsize = jnp.dtype(inp_vectors.dtype).itemsize
    vmem_cap = _vmem_capacity_bytes()
    # Leave compiler headroom: <=48 MiB on v7x (64 MiB phys), <=80 MiB on
    # v5e/v6e (128 MiB phys).
    vmem_limit = min((vmem_cap * 3) // 4, 80 * 1024 * 1024)

    tb = _pick_tile_b(B, N, D, itemsize, vmem_cap)
    num_tiles = -(-B // tb)
    b_pad = num_tiles * tb

    if b_pad != B:
        # TODO(synk): for very large B, avoid this host-side pad (full HBM copy
        # of noise) by relying on edge-block masking only.
        pad = b_pad - B
        inp_vectors = jnp.pad(inp_vectors, ((0, pad), (0, 0)))
        out_vectors = jnp.pad(out_vectors, ((0, pad), (0, 0)))
        noise_vectors = jnp.pad(noise_vectors, ((0, pad), (0, 0), (0, 0)))

    cost = pl.CostEstimate(
        flops=2 * b_pad * D * (N + 1),
        transcendentals=2 * b_pad * (N + 1),     # one exp + one log per logit
        bytes_accessed=b_pad * D * (N + 2) * itemsize + num_tiles * 128 * 4,
    )

    partial = pl.pallas_call(
        _make_kernel(B, tb),
        out_shape=jax.ShapeDtypeStruct((num_tiles, 1, 128), jnp.float32),
        grid=(num_tiles,),
        in_specs=[
            pl.BlockSpec((tb, D), lambda i: (i, 0)),
            pl.BlockSpec((tb, D), lambda i: (i, 0)),
            pl.BlockSpec((tb, N, D), lambda i: (i, 0, 0)),
        ],
        out_specs=pl.BlockSpec((1, 1, 128), lambda i: (i, 0, 0)),
        compiler_params=pltpu.CompilerParams(
            dimension_semantics=("parallel",),
            vmem_limit_bytes=vmem_limit,
        ),
        cost_estimate=cost,
    )(inp_vectors, out_vectors, noise_vectors)

    # Per-tile partial sums (pad rows already masked in-kernel): -sum / B.
    return -jnp.sum(partial[:, 0, 0]) / B


def _reference_loss(inp_vectors, out_vectors, noise_vectors):
    inp = inp_vectors.astype(jnp.float32)
    out = out_vectors.astype(jnp.float32)
    noise = noise_vectors.astype(jnp.float32)
    out_loss = jax.nn.log_sigmoid(jnp.sum(inp * out, axis=-1))
    noise_loss = jnp.sum(
        jax.nn.log_sigmoid(-jnp.einsum("bnd,bd->bn", noise, inp)), axis=1
    )
    return -jnp.mean(out_loss + noise_loss)


if __name__ == "__main__":
    # Small, deterministic example shapes consistent with word2vec negative
    # sampling: batch=8 center/context embeddings of dim 32, 4 noise samples each.
    B, N, D = 8, 4, 32
    key = jax.random.PRNGKey(0)
    k_inp, k_out, k_noise = jax.random.split(key, 3)
    inp_vectors = jax.random.normal(k_inp, (B, D), dtype=jnp.float32) * 0.5
    out_vectors = jax.random.normal(k_out, (B, D), dtype=jnp.float32) * 0.5
    noise_vectors = jax.random.normal(k_noise, (B, N, D), dtype=jnp.float32) * 0.5

    ref = _reference_loss(inp_vectors, out_vectors, noise_vectors)

    # f32 path: must match the reference tightly.
    loss = negative_sampling_loss(inp_vectors, out_vectors, noise_vectors)
    loss = jax.block_until_ready(loss)
    assert jnp.allclose(loss, ref, rtol=1e-5, atol=1e-5), (loss, ref)

    # bf16-input path (halves HBM reads; f32 accumulation in-kernel).
    loss_bf16 = negative_sampling_loss(
        inp_vectors, out_vectors, noise_vectors, downcast_to_bf16=True)
    loss_bf16 = jax.block_until_ready(loss_bf16)
    assert jnp.allclose(loss_bf16, ref, rtol=5e-2, atol=5e-2), (loss_bf16, ref)

    print("KERNEL_OK")
</pallas_src>

<mosaic_0001>
module attributes {stable_mosaic.version = 11 : i64} {
  func.func @kernel(%arg0: i32, %arg1: memref<8x32xf32, #tpu.memory_space<vmem>>, %arg2: memref<8x32xf32, #tpu.memory_space<vmem>>, %arg3: memref<8x4x32xf32, #tpu.memory_space<vmem>>, %arg4: memref<1x1x128xf32, #tpu.memory_space<vmem>>) attributes {dimension_semantics = [#tpu.dimension_semantics<parallel>], iteration_bounds = array<i64: 1>, scalar_prefetch = 0 : i64, scratch_operands = 0 : i64, tpu.core_type = #tpu.core_type<tc>, window_params = [{transform_indices = @transform_0, window_bounds = array<i64: 8, 32>}, {transform_indices = @transform_1, window_bounds = array<i64: 8, 32>}, {transform_indices = @transform_2, window_bounds = array<i64: 8, 4, 32>}, {transform_indices = @transform_3, window_bounds = array<i64: 1, 1, 128>}]} {
    %c0 = arith.constant 0 : index
    %c0_0 = arith.constant 0 : index
    %0 = vector.load %arg1[%c0, %c0_0] : memref<8x32xf32, #tpu.memory_space<vmem>>, vector<8x32xf32>
    %c0_1 = arith.constant 0 : index
    %c0_2 = arith.constant 0 : index
    %1 = vector.load %arg2[%c0_1, %c0_2] : memref<8x32xf32, #tpu.memory_space<vmem>>, vector<8x32xf32>
    %c0_3 = arith.constant 0 : index
    %c0_4 = arith.constant 0 : index
    %c0_5 = arith.constant 0 : index
    %2 = vector.load %arg3[%c0_3, %c0_4, %c0_5] : memref<8x4x32xf32, #tpu.memory_space<vmem>>, vector<8x4x32xf32>
    %3 = arith.mulf %0, %1 : vector<8x32xf32>
    %cst = arith.constant dense<0.000000e+00> : vector<8xf32>
    %4 = vector.multi_reduction <add>, %3, %cst [1] : vector<8x32xf32> to vector<8xf32>
    %5 = vector.shape_cast %4 : vector<8xf32> to vector<8x1xf32>
    %cst_6 = arith.constant 0.000000e+00 : f32
    %6 = vector.broadcast %cst_6 : f32 to vector<8x1xf32>
    %7 = arith.minimumf %5, %6 : vector<8x1xf32>
    %8 = math.absf %5 : vector<8x1xf32>
    %cst_7 = arith.constant 0.000000e+00 : f32
    %9 = vector.broadcast %cst_7 : f32 to vector<8x1xf32>
    %10 = arith.subf %9, %8 : vector<8x1xf32>
    %11 = math.exp %10 : vector<8x1xf32>
    %cst_8 = arith.constant 1.000000e+00 : f32
    %12 = vector.broadcast %cst_8 : f32 to vector<8x1xf32>
    %13 = arith.addf %12, %11 : vector<8x1xf32>
    %14 = math.log %13 : vector<8x1xf32>
    %15 = arith.subf %7, %14 : vector<8x1xf32>
    %16 = vector.shape_cast %0 : vector<8x32xf32> to vector<8x1x32xf32>
    %17 = vector.broadcast %16 : vector<8x1x32xf32> to vector<8x4x32xf32>
    %18 = arith.mulf %2, %17 : vector<8x4x32xf32>
    %cst_9 = arith.constant dense<0.000000e+00> : vector<8x4xf32>
    %19 = vector.multi_reduction <add>, %18, %cst_9 [2] : vector<8x4x32xf32> to vector<8x4xf32>
    %cst_10 = arith.constant 0.000000e+00 : f32
    %20 = vector.broadcast %cst_10 : f32 to vector<8x4xf32>
    %21 = arith.subf %20, %19 : vector<8x4xf32>
    %cst_11 = arith.constant 0.000000e+00 : f32
    %22 = vector.broadcast %cst_11 : f32 to vector<8x4xf32>
    %23 = arith.minimumf %21, %22 : vector<8x4xf32>
    %24 = math.absf %21 : vector<8x4xf32>
    %cst_12 = arith.constant 0.000000e+00 : f32
    %25 = vector.broadcast %cst_12 : f32 to vector<8x4xf32>
    %26 = arith.subf %25, %24 : vector<8x4xf32>
    %27 = math.exp %26 : vector<8x4xf32>
    %cst_13 = arith.constant 1.000000e+00 : f32
    %28 = vector.broadcast %cst_13 : f32 to vector<8x4xf32>
    %29 = arith.addf %28, %27 : vector<8x4xf32>
    %30 = math.log %29 : vector<8x4xf32>
    %31 = arith.subf %23, %30 : vector<8x4xf32>
    %cst_14 = arith.constant dense<0.000000e+00> : vector<8xf32>
    %32 = vector.multi_reduction <add>, %31, %cst_14 [1] : vector<8x4xf32> to vector<8xf32>
    %33 = vector.shape_cast %32 : vector<8xf32> to vector<8x1xf32>
    %34 = arith.addf %15, %33 : vector<8x1xf32>
    %c8_i32 = arith.constant 8 : i32
    %35 = arith.muli %arg0, %c8_i32 : i32
    %36 = tpu.iota {dimensions = array<i32: 0>} : vector<8x1xi32>
    %37 = vector.broadcast %35 : i32 to vector<8x1xi32>
    %38 = arith.addi %37, %36 : vector<8x1xi32>
    %c8_i32_15 = arith.constant 8 : i32
    %39 = vector.broadcast %c8_i32_15 : i32 to vector<8x1xi32>
    %40 = arith.cmpi slt, %38, %39 : vector<8x1xi32>
    %cst_16 = arith.constant 0.000000e+00 : f32
    %41 = vector.broadcast %cst_16 : f32 to vector<8x1xf32>
    %42 = arith.select %40, %34, %41 : vector<8x1xi1>, vector<8x1xf32>
    %43 = vector.shape_cast %42 : vector<8x1xf32> to vector<1x8x1xf32>
    %cst_17 = arith.constant dense<0.000000e+00> : vector<1xf32>
    %44 = vector.multi_reduction <add>, %43, %cst_17 [1, 2] : vector<1x8x1xf32> to vector<1xf32>
    %45 = vector.shape_cast %44 : vector<1xf32> to vector<1x1x1xf32>
    %46 = vector.extract %45[0, 0, 0] : f32 from vector<1x1x1xf32>
    %47 = vector.broadcast %46 : f32 to vector<1x1xf32>
    %48 = vector.shape_cast %47 : vector<1x1xf32> to vector<1x1x1xf32>
    %49 = vector.shape_cast %48 : vector<1x1x1xf32> to vector<1x1x1xf32>
    %50 = vector.broadcast %49 : vector<1x1x1xf32> to vector<1x1x128xf32>
    %c0_18 = arith.constant 0 : index
    %c0_19 = arith.constant 0 : index
    %c0_20 = arith.constant 0 : index
    %51 = vector.load %arg4[%c0_18, %c0_19, %c0_20] : memref<1x1x128xf32, #tpu.memory_space<vmem>>, vector<1x1x128xf32>
    tpu.vector_store %arg4[%c0_18, %c0_19, %c0_20], %50 {strides = array<i32>} : memref<1x1x128xf32, #tpu.memory_space<vmem>>, vector<1x1x128xf32>,
    return
  }
  func.func @transform_0(%arg0: i32) -> (i32, i32) {
    %c0_i32 = arith.constant 0 : i32
    %c0_i32_0 = arith.constant 0 : i32
    return %arg0, %c0_i32 : i32, i32
  }
  func.func @transform_1(%arg0: i32) -> (i32, i32) {
    %c0_i32 = arith.constant 0 : i32
    %c0_i32_0 = arith.constant 0 : i32
    return %arg0, %c0_i32 : i32, i32
  }
  func.func @transform_2(%arg0: i32) -> (i32, i32, i32) {
    %c0_i32 = arith.constant 0 : i32
    %c0_i32_0 = arith.constant 0 : i32
    %c0_i32_1 = arith.constant 0 : i32
    return %arg0, %c0_i32, %c0_i32_0 : i32, i32, i32
  }
  func.func @transform_3(%arg0: i32) -> (i32, i32, i32) {
    %c0_i32 = arith.constant 0 : i32
    %c0_i32_0 = arith.constant 0 : i32
    %c0_i32_1 = arith.constant 0 : i32
    return %arg0, %c0_i32, %c0_i32_0 : i32, i32, i32
  }
}

</mosaic_0001>

<bundles_post_ra>
// kernel: tpu_custom_call.1
= control target key start
LH: loop header
LB: loop body
LE: loop exit
PB: predicated region body
PF: predicated region fallthrough
CT: control target
= control target key end

     0   :  { %8 = vsyncpa [#allocation3], 0  ;;  %s624_s0 = inlined_call_operand.hbm [shape: f32[8,32], index: 0, kind: input, shape index: {}]   ;;  %s625_s1 = inlined_call_operand.hbm [shape: f32[8,32], index: 1, kind: input, shape index: {}]   ;;  %s626_s2 = inlined_call_operand.hbm [shape: f32[8,4,32], index: 2, kind: input, shape index: {}]   ;;  %s627_s3 = inlined_call_operand.hbm [shape: f32[1,1,128], index: 3, kind: output, shape index: {}]  }
   0x1   :  { %9 = vsyncpa [#allocation6], 0 }
   0x2   :  { %10 = vsyncpa [#allocation4], 0  ;;  %s509_s12 = smov [#allocation5]   ;;  %s510_s14 = smov [#allocation2]  }
   0x3   :  { %s27_s13 = sshll.u32 %s509_s12, 4  ;;  %s17_s15 = sshll.u32 %s510_s14, 4  ;;  %s28_s13 = int_to_ptr.vmem [resolvable:$true] %s27_s13  ;;  %s18_s15 = int_to_ptr.vmem [resolvable:$true] %s17_s15 }
   0x4   :  { %s431_s16 = scalar_lea.vmem %s28_s13, 128  ;;  %p436_p1 = scmp.lt.s32.totalorder %s28_s13, %s28_s13 }
   0x5   :  { %p432_p0 = scmp.ne.s32.totalorder %s28_s13, %s431_s16  ;;  %p437_p2 = scmp.lt.s32.totalorder %s431_s16, %s431_s16 }
   0x7   :  { %p438_p3 = por %p437_p2, %p436_p1 }
   0x9   :  { %p439_p4 = pnand %p438_p3, %p432_p0 }
   0xb   :  { %442 = shalt.err (!%p439_p4)
}
   0xc   :  { %30 = dma.hbm_to_vmem [thread:$0]  %s625_s1, 128, %s28_s13, [#allocation6]  }
   0xd   :  { %s451_s19 = scalar_lea.vmem %s18_s15, 128  ;;  %p456_p6 = scmp.lt.s32.totalorder %s18_s15, %s18_s15 }
   0xe   :  { %p452_p5 = scmp.ne.s32.totalorder %s18_s15, %s451_s19  ;;  %p457_p7 = scmp.lt.s32.totalorder %s451_s19, %s451_s19 }
  0x10   :  { %p458_p8 = por %p457_p7, %p456_p6 }
  0x12   :  { %p459_p9 = pnand %p458_p8, %p452_p5 }
  0x14   :  { %462 = shalt.err (!%p459_p9)
}
  0x15   :  { %20 = dma.hbm_to_vmem [thread:$0]  %s624_s0, 128, %s18_s15, [#allocation3]  }
  0x16   :  { %s511_s22 = smov [#allocation7]  }
  0x17   :  { %s36_s23 = sshll.u32 %s511_s22, 4  ;;  %s37_s23 = int_to_ptr.vmem [resolvable:$true] %s36_s23 }
  0x18   :  { %s471_s24 = scalar_lea.vmem %s37_s23, 512  ;;  %p476_p11 = scmp.lt.s32.totalorder %s37_s23, %s37_s23 }
  0x19   :  { %p472_p10 = scmp.ne.s32.totalorder %s37_s23, %s471_s24  ;;  %p477_p12 = scmp.lt.s32.totalorder %s471_s24, %s471_s24 }
  0x1b   :  { %p478_p13 = por %p477_p12, %p476_p11 }
  0x1d   :  { %p479_p0 = pnand %p478_p13, %p472_p10 }
  0x1f   :  { %482 = shalt.err (!%p479_p0)
}
  0x20   :  { %s512_s1 = smov 64   ;;  %s513_s25 = smov 4  }
  0x21   :  { %42 = dma.hbm_to_vmem [thread:$0]  %s626_s2, 512, %s37_s23, [#allocation6], %s512_s1, %s512_s1, %s513_s25  }
  0x22   :  { %503 = dma.done.wait [#allocation3], 128  }
  0x23   :  { %504 = vsyncadd [#allocation3], 4294967168 }
  0x24   :  { %505 = dma.done.wait [#allocation6], 640  }
  0x25   :  { %506 = vsyncadd [#allocation6], 4294966656  ;;  %v81_v0 = vlaneseq  ;;  %v514_v1 = vmov 1966171168   ;;  %v52_v8 = vld [vmem:[#allocation2] sm:$0xff]  ;;  %vm174_vm0 = vcmask 257024  }
  0x26   :  { %v79_v2 = vunpack.c.l.s4 %v514_v1  ;;  %v77_v11 = vcombine.high %v52_v8, %v52_v8  ;;  %v54_v15 = vld [vmem:[#allocation7] sm:$0xf]  ;;  %v56_v20 = vld [vmem:[#allocation7 + $0x8] sm:$0xf]  ;;  %v55_v21 = vld [vmem:[#allocation7 + $0x4] sm:$0xf] }
  0x27   :  { %v82_v3 = vshrl.u32 %v81_v0, 7  ;;  %v288_v4 = vand.u32 127, %v81_v0  ;;  %v58_v27 = vld [vmem:[#allocation7 + $0x10] sm:$0xf]  ;;  %v57_v28 = vld [vmem:[#allocation7 + $0xc] sm:$0xf] }
  0x28   :  { %v80_v5 = vunpack.c.0.s8 %v79_v2  ;;  %v59_v37 = vld [vmem:[#allocation7 + $0x14] sm:$0xf]  ;;  %v60_v44 = vld [vmem:[#allocation7 + $0x18] sm:$0xf]  ;;  %v61_v48 = vld [vmem:[#allocation7 + $0x1c] sm:$0xf] }
  0x29   :  { %v545_v6 = vsub.s32 %v288_v4, %v82_v3  ;;  %v128_v10 = vsub.s32 0, %v82_v3  ;;  %v53_v51 = vld [vmem:[#allocation5] sm:$0xff]  ;;  %vm63_vm1 = vcmask 261120   ;;  %vm321_vm2 = vcmask 1041409   ;;  %s515_s0 = smov [#allocation8]  }
  0x2a   :  { %v83_v7 = vsub.s32 %v80_v5, %v82_v3  ;;  %v62_v55 = vmul.f32 %v53_v51, %v52_v8  ;;  %vm323_vm3 = vcmask 1042434   ;;  %vm325_vm4 = vcmask 1043459   ;;  %s367_s2 = sshll.u32 %s515_s0, 4  ;;  %s368_s2 = int_to_ptr.vmem [resolvable:$true] %s367_s2 }
  0x2b   :  { %vm327_vm5 = vcmask 1044484   ;;  %vm329_vm6 = vcmask 1045509   ;;  %vm331_vm7 = vcmask 1046534   ;;  %vm333_vm8 = vcmask 1047559   ;;  %s483_s29 = scalar_lea.vmem %s368_s2, 16  ;;  %s487_s30 = scalar_lea.vmem %s368_s2, 32 }
  0x2c   :  { %v84_v9 = vrot.slane %v52_v8, %v83_v7  ;;  %v91_v14 = vrot.slane %v77_v11, %v83_v7  ;;  %v64_v57 = vsel %vm63_vm1, %v62_v55, 0.0  ;;  %vm336_vm9 = vcmask 31744   ;;  %p484_p1 = scmp.ne.s32.totalorder %s368_s2, %s483_s29  ;;  %p488_p2 = scmp.lt.s32.totalorder %s368_s2, %s368_s2 }
  0x2d   :  { %vm348_vm10 = vcmask 7168   ;;  %p489_p3 = scmp.lt.s32.totalorder %s487_s30, %s483_s29 }
  0x2e   :  { %v100_v12 = vrot.slane %v84_v9, %v83_v7  ;;  %v92_v13 = vcombine.high %v84_v9, %v84_v9  ;;  %v107_v19 = vrot.slane %v91_v14, %v83_v7  ;;  %v93_v22 = vcombine.high %v91_v14, %v91_v14 }
  0x2f   :  { %p490_p4 = por %p489_p3, %p488_p2 }
  0x30   :  { %v129_v16 = vrot.slane %v100_v12, %v128_v10  ;;  %v122_v17 = vcombine.high %v100_v12, %v100_v12  ;;  %v114_v18 = vrot.slane %v92_v13, %v83_v7  ;;  %v145_v29 = vrot.slane %v107_v19, %v128_v10 }
  0x31   :  { %v121_v30 = vrot.slane %v93_v22, %v83_v7  ;;  %v123_v31 = vcombine.high %v107_v19, %v107_v19  ;;  %p491_p5 = pnand %p490_p4, %p484_p1 }
  0x32   :  { %v166_v23 = vmul.f32 %v129_v16, %v54_v15  ;;  %v137_v24 = vrot.slane %v122_v17, %v128_v10  ;;  %v133_v25 = vrot.slane %v114_v18, %v128_v10  ;;  %v124_v26 = vcombine.high %v114_v18, %v114_v18 }
  0x33   :  { %v170_v36 = vmul.f32 %v145_v29, %v58_v27  ;;  %v149_v38 = vrot.slane %v121_v30, %v128_v10  ;;  %v125_v39 = vcombine.high %v121_v30, %v121_v30  ;;  %v153_v43 = vrot.slane %v123_v31, %v128_v10 }
  0x34   :  { %v175_v32 = vsel %vm174_vm0, %v166_v23, 0.0  ;;  %v168_v33 = vmul.f32 %v137_v24, %v56_v20  ;;  %v167_v34 = vmul.f32 %v133_v25, %v55_v21  ;;  %v141_v35 = vrot.slane %v124_v26, %v128_v10 }
  0x35   :  { %176 = vadd.xlane.f32.xlu0 %v175_v32  ;;  %v171_v46 = vmul.f32 %v149_v38, %v59_v37  ;;  %v157_v47 = vrot.slane %v125_v39, %v128_v10  ;;  %v187_v49 = vsel %vm174_vm0, %v170_v36, 0.0  ;;  %v172_v50 = vmul.f32 %v153_v43, %v60_v44 }
  0x36   :  { %v181_v40 = vsel %vm174_vm0, %v168_v33, 0.0  ;;  %v178_v41 = vsel %vm174_vm0, %v167_v34, 0.0  ;;  %v169_v42 = vmul.f32 %v141_v35, %v57_v28 }
  0x37   :  { %182 = vadd.xlane.f32.xlu1 %v181_v40  ;;  %v190_v52 = vsel %vm174_vm0, %v171_v46, 0.0  ;;  %v173_v53 = vmul.f32 %v157_v47, %v61_v48  ;;  %v193_v54 = vsel %vm174_vm0, %v172_v50, 0.0 }
  0x38   :  { %v184_v45 = vsel %vm174_vm0, %v169_v42, 0.0 }
  0x39   :  { %179 = vadd.xlane.f32.xlu0 %v178_v41  ;;  %v196_v56 = vsel %vm174_vm0, %v173_v53, 0.0 }
  0x3b   :  { %185 = vadd.xlane.f32.xlu1 %v184_v45 }
  0x3d   :  { %188 = vadd.xlane.f32.xlu0 %v187_v49 }
  0x3f   :  { %191 = vadd.xlane.f32.xlu1 %v190_v52 }
  0x41   :  { %194 = vadd.xlane.f32.xlu0 %v193_v54 }
  0x43   :  { %197 = vadd.xlane.f32.xlu1 %v196_v56 }
  0x45   :  { %65 = vadd.xlane.f32.xlu0 %v64_v57 }
  0xbe   :  { %v555_v58 = vpop.xlane.xlu0 %176 }
  0xbf   :  { %v199_v59 = vsub.f32 0.0, %v555_v58 }
  0xc0   :  { %v558_v60 = vpop.xlane.xlu1 %182 }
  0xc1   :  { %v215_v61 = vand.u32 2147483647, %v199_v59  ;;  %v201_v62 = vsub.f32 0.0, %v558_v60  ;;  %v207_v54 = vmin.f32 %v199_v59, 0.0 }
  0xc2   :  { %v563_v63 = vpop.xlane.xlu0 %179 }
  0xc3   :  { %v223_v0 = vsub.f32 0.0, %v215_v61  ;;  %v217_v1 = vand.u32 2147483647, %v201_v62  ;;  %v200_v2 = vsub.f32 0.0, %v563_v63  ;;  %v209_v57 = vmin.f32 %v201_v62, 0.0 }
  0xc4   :  { %v568_v3 = vpop.xlane.xlu1 %185 }
  0xc5   :  { %v231_v4 = vmul.f32 1.442695, %v223_v0  ;;  %v225_v5 = vsub.f32 0.0, %v217_v1  ;;  %v216_v7 = vand.u32 2147483647, %v200_v2  ;;  %v202_v8 = vsub.f32 0.0, %v568_v3 }
  0xc6   :  { %v573_v9 = vpop.xlane.xlu0 %188  ;;  %v208_v0 = vmin.f32 %v200_v2, 0.0 }
  0xc7   :  { %387 = vpow2.f32 %v231_v4  ;;  %v235_v10 = vmul.f32 1.442695, %v225_v5  ;;  %v224_v11 = vsub.f32 0.0, %v216_v7  ;;  %v203_v12 = vsub.f32 0.0, %v573_v9 }
  0xc8   :  { %v218_v13 = vand.u32 2147483647, %v202_v8  ;;  %v578_v14 = vpop.xlane.xlu1 %191 }
  0xc9   :  { %389 = vpow2.f32 %v235_v10  ;;  %v233_v15 = vmul.f32 1.442695, %v224_v11  ;;  %v219_v16 = vand.u32 2147483647, %v203_v12  ;;  %v204_v18 = vsub.f32 0.0, %v578_v14 }
  0xca   :  { %v226_v17 = vsub.f32 0.0, %v218_v13  ;;  %v583_v19 = vpop.xlane.xlu0 %194  ;;  %v210_v11 = vmin.f32 %v202_v8, 0.0  ;;  %v211_v62 = vmin.f32 %v203_v12, 0.0 }
  0xcb   :  { %391 = vpow2.f32 %v233_v15  ;;  %v227_v20 = vsub.f32 0.0, %v219_v16  ;;  %v205_v21 = vsub.f32 0.0, %v583_v19  ;;  %v220_v23 = vand.u32 2147483647, %v204_v18 }
  0xcc   :  { %v237_v22 = vmul.f32 1.442695, %v226_v17  ;;  %v588_v24 = vpop.xlane.xlu1 %197 }
  0xcd   :  { %v239_v25 = vmul.f32 1.442695, %v227_v20  ;;  %v221_v26 = vand.u32 2147483647, %v205_v21  ;;  %v206_v27 = vsub.f32 0.0, %v588_v24  ;;  %v228_v28 = vsub.f32 0.0, %v220_v23 }
  0xce   :  { %393 = vpow2.f32 %v237_v22  ;;  %v212_v20 = vmin.f32 %v204_v18, 0.0  ;;  %v213_v12 = vmin.f32 %v205_v21, 0.0  ;;  %v66_v24 = vpop.xlane.xlu0 %65 }
  0xcf   :  { %395 = vpow2.f32 %v239_v25  ;;  %v229_v29 = vsub.f32 0.0, %v221_v26  ;;  %v222_v30 = vand.u32 2147483647, %v206_v27  ;;  %v241_v31 = vmul.f32 1.442695, %v228_v28 }
  0xd1   :  { %v243_v32 = vmul.f32 1.442695, %v229_v29  ;;  %v230_v33 = vsub.f32 0.0, %v222_v30  ;;  %397 = vpow2.f32 %v241_v31  ;;  %v214_v31 = vmin.f32 %v206_v27, 0.0 }
  0xd2   :  { %v68_v27 = vand.u32 2147483647, %v66_v24 }
  0xd3   :  { %399 = vpow2.f32 %v243_v32  ;;  %v245_v34 = vmul.f32 1.442695, %v230_v33 }
  0xd4   :  { %v388_v35 = vpop.eup %387 }
  0xd5   :  { %v247_v36 = vadd.f32 1.0, %v388_v35  ;;  %401 = vpow2.f32 %v245_v34 }
  0xd6   :  { %v390_v37 = vpop.eup %389 }
  0xd7   :  { %403 = vlog2.f32 %v247_v36  ;;  %v249_v38 = vadd.f32 1.0, %v390_v37 }
  0xd8   :  { %v392_v39 = vpop.eup %391 }
  0xd9   :  { %405 = vlog2.f32 %v249_v38  ;;  %v248_v40 = vadd.f32 1.0, %v392_v39  ;;  %v69_v38 = vsub.f32 0.0, %v68_v27 }
  0xdb   :  { %v394_v41 = vpop.eup %393  ;;  %407 = vlog2.f32 %v248_v40  ;;  %v70_v39 = vmul.f32 1.442695, %v69_v38 }
  0xdc   :  { %v396_v42 = vpop.eup %395  ;;  %v250_v43 = vadd.f32 1.0, %v394_v41 }
  0xdd   :  { %v251_v44 = vadd.f32 1.0, %v396_v42 }
  0xde   :  { %409 = vlog2.f32 %v250_v43  ;;  %v398_v45 = vpop.eup %397  ;;  %v67_v43 = vmin.f32 %v66_v24, 0.0 }
  0xdf   :  { %411 = vlog2.f32 %v251_v44  ;;  %v252_v47 = vadd.f32 1.0, %v398_v45 }
  0xe0   :  { %v400_v46 = vpop.eup %399 }
  0xe1   :  { %v253_v48 = vadd.f32 1.0, %v400_v46  ;;  %413 = vlog2.f32 %v252_v47 }
  0xe2   :  { %v402_v49 = vpop.eup %401 }
  0xe3   :  { %415 = vlog2.f32 %v253_v48  ;;  %v254_v50 = vadd.f32 1.0, %v402_v49 }
  0xe4   :  { %v404_v51 = vpop.eup %403 }
  0xe5   :  { %v256_v52 = vmul.f32 0.6931472, %v404_v51  ;;  %417 = vlog2.f32 %v254_v50 }
  0xe6   :  { %v406_v53 = vpop.eup %405  ;;  %419 = vpow2.f32 %v70_v39 }
  0xe7   :  { %v260_v55 = vmul.f32 0.6931472, %v406_v53  ;;  %v271_v61 = vsub.f32 %v207_v54, %v256_v52 }
  0xe8   :  { %v408_v56 = vpop.eup %407 }
  0xe9   :  { %v258_v1 = vmul.f32 0.6931472, %v408_v56  ;;  %v273_v4 = vsub.f32 %v209_v57, %v260_v55  ;;  %v292_v59 = vrot.slane %v271_v61, %v545_v6 }
  0xeb   :  { %v410_v5 = vpop.eup %409  ;;  %v272_v7 = vsub.f32 %v208_v0, %v258_v1  ;;  %v300_v2 = vrot.slane %v273_v4, %v545_v6 }
  0xec   :  { %v412_v10 = vpop.eup %411  ;;  %v262_v58 = vmul.f32 0.6931472, %v410_v5 }
  0xed   :  { %v296_v60 = vrot.slane %v272_v7, %v545_v6  ;;  %v264_v63 = vmul.f32 0.6931472, %v412_v10 }
  0xee   :  { %v274_v13 = vsub.f32 %v210_v11, %v262_v58  ;;  %v414_v15 = vpop.eup %413 }
  0xef   :  { %v322_v16 = vsel %vm321_vm2, %v296_v60, %v292_v59  ;;  %v275_v17 = vsub.f32 %v211_v62, %v264_v63  ;;  %v266_v22 = vmul.f32 0.6931472, %v414_v15 }
  0xf0   :  { %v416_v3 = vpop.eup %415  ;;  %v304_v8 = vrot.slane %v274_v13, %v545_v6  ;;  %v324_v23 = vsel %vm323_vm3, %v300_v2, %v322_v16 }
  0xf1   :  { %v308_v9 = vrot.slane %v275_v17, %v545_v6  ;;  %v268_v25 = vmul.f32 0.6931472, %v416_v3  ;;  %v276_v28 = vsub.f32 %v212_v20, %v266_v22 }
  0xf2   :  { %v418_v26 = vpop.eup %417  ;;  %v326_v29 = vsel %vm325_vm4, %v304_v8, %v324_v23 }
  0xf3   :  { %v277_v30 = vsub.f32 %v213_v12, %v268_v25  ;;  %v270_v32 = vmul.f32 0.6931472, %v418_v26  ;;  %v328_v14 = vsel %vm327_vm5, %v308_v9, %v326_v29  ;;  %v312_v18 = vrot.slane %v276_v28, %v545_v6  ;;  %v420_v40 = vpop.eup %419 }
  0xf4   :  { %v72_v41 = vadd.f32 1.0, %v420_v40 }
  0xf5   :  { %v316_v33 = vrot.slane %v277_v30, %v545_v6  ;;  %v278_v34 = vsub.f32 %v214_v31, %v270_v32  ;;  %v330_v19 = vsel %vm329_vm6, %v312_v18, %v328_v14 }
  0xf6   :  { %421 = vlog2.f32 %v72_v41 }
  0xf7   :  { %v320_v21 = vrot.slane %v278_v34, %v545_v6  ;;  %v332_v35 = vsel %vm331_vm7, %v316_v33, %v330_v19 }
  0xf9   :  { %v334_v36 = vsel %vm333_vm8, %v320_v21, %v332_v35 }
  0xfa   :  { %v337_v37 = vsel %vm336_vm9, %v334_v36, 0.0 }
  0xfb   :  { %338 = vadd.xlane.f32.xlu1 %v337_v37 }
 0x103   :  { %v422_v42 = vpop.eup %421 }
 0x104   :  { %v74_v44 = vmul.f32 0.6931472, %v422_v42 }
 0x106   :  { %v75_v45 = vsub.f32 %v67_v43, %v74_v44 }
 0x184   :  { %v339_v46 = vpop.xlane.xlu1 %338 }
 0x185   :  { %v340_v6 = vadd.f32 %v339_v46, %v75_v45 }
 0x187   :  { %v349_v47 = vsel %vm348_vm10, %v340_v6, 0.0 }
 0x188   :  { %350 = vadd.xlane.f32.xlu0 %v349_v47 }
 0x211   :  { %v351_v48 = vpop.xlane.xlu0 %350 }
 0x212   :  { %v352_v49 = vrot.slane %v351_v48, 4 }
 0x214   :  { %v353_v50 = vadd.f32 %v352_v49, %v351_v48 }
 0x216   :  { %v354_v51 = vrot.slane %v353_v50, 2 }
 0x218   :  { %v355_v52 = vadd.f32 %v354_v51, %v353_v50 }
 0x21a   :  { %v356_v53 = vrot.slane %v355_v52, 1 }
 0x21c   :  { %v357_v54 = vadd.f32 %v356_v53, %v355_v52 }
 0x21e   :  { %377 = vpush %v357_v54 }
 0x24f   :  { %s378_s28 = spop %377 }
 0x250   :  { %v359_v55 = vstv %s378_s28 }
 0x251   :  { %360 = vst [vmem:[#allocation8] sm:$0x1] %v359_v55 }
 0x252   :  { %494 = shalt.err (!%p491_p5)
}
 0x253   :  { %370 = dma.vmem_to_hbm [thread:$0]  %s368_s2, 16, %s627_s3, [#allocation4]  }
 0x254   :  { %507 = dma.done.wait [#allocation4], 16  }
 0x255   :  { %508 = vsyncadd [#allocation4], 4294967280 }
 0x256   :  { %374 = vsyncpa [#allocation3], 1 }
 0x257   :  { %375 = vsyncpa [#allocation6], 1 }
 0x258   :  { %376 = vsyncpa [#allocation4], 1 }

</bundles_post_ra>
